<compile_context>
chip_gen: v7x
topology: tpu7x:2x2x1
jax: 0.10.0
libtpu: 0.0.40
codegen_flags: <defaults>
</compile_context>

<pallas_src>
import jax
import jax.numpy as jnp
from jax.experimental import pallas as pl
from jax.experimental.pallas import tpu as pltpu

LANE = 128
SUBLANE = 8


def _round_up(x, m):
    return (x + m - 1) // m * m


def _sigmoid(z):
    # exp -> EUP slot; division stays exact f32 (v5e VPU/EUP have no bf16).
    return 1.0 / (1.0 + jnp.exp(-z))


def prepare_params(w1, b1, w2, b2, *, param_dtype=jnp.float32):
    """One-time parameter prep (hoisted out of the forward path).

    w1: [hl, in], b1: [hl], w2: [out, hl], b2: [out]  (PyTorch nn.Linear layout)
    Returns MXU-natural, padded operands:
      w1_p: [in, hl_p], b1_p: [1, hl_p], w2_p: [hl_p, out_p], b2_p: [1, out]
    Padded hidden ROWS of w2_p are exactly zero, so the sigmoid(0)=0.5 values
    in padded hidden lanes contribute nothing (preserved invariant).
    """
    hl, in_size = w1.shape
    out_size, hl2 = w2.shape
    assert hl2 == hl
    hl_p = _round_up(hl, LANE)
    out_p = _round_up(out_size, LANE)

    w1_p = jnp.zeros((in_size, hl_p), param_dtype).at[:, :hl].set(
        w1.T.astype(param_dtype))
    b1_p = jnp.zeros((1, hl_p), jnp.float32).at[0, :hl].set(
        b1.astype(jnp.float32))
    w2_p = jnp.zeros((hl_p, out_p), param_dtype).at[:hl, :out_size].set(
        w2.T.astype(param_dtype))
    b2_p = b2.astype(jnp.float32).reshape(1, out_size)
    return w1_p, b1_p, w2_p, b2_p


def _mlp_kernel(x_ref, w1_ref, b1_ref, w2_ref, b2_ref, o_ref):
    out_size = o_ref.shape[-1]
    x = x_ref[...].astype(w1_ref.dtype)

    # Layer 1: [tb, in] @ [in, hl_p] on the MXU, f32 accumulation.
    z1 = jnp.dot(x, w1_ref[...], preferred_element_type=jnp.float32)
    h = _sigmoid(z1 + b1_ref[...])                       # [tb, hl_p], f32

    # Layer 2: [tb, hl_p] @ [hl_p, out_p]; padded hidden rows of W2p are zero.
    z2 = jnp.dot(h.astype(w2_ref.dtype), w2_ref[...],
                 preferred_element_type=jnp.float32)     # [tb, out_p]

    # Compact epilogue + store: only the real output lanes are written back.
    y = _sigmoid(z2[:, :out_size] + b2_ref[...])         # [tb, out_size]
    o_ref[...] = y.astype(o_ref.dtype)


def neural_net_forward(x, params, *, batch_tile=2048):
    """x: [B, input_size]; params from prepare_params. Returns [B, out_size] f32."""
    w1_p, b1_p, w2_p, b2_p = params
    B, in_size = x.shape
    assert w1_p.shape[0] == in_size
    hl_p = w1_p.shape[1]
    out_p = w2_p.shape[1]
    out_size = b2_p.shape[1]

    # Batch tiling: large tiles amortize the ~0.35us/step overhead; cap the
    # tile so the 1-D grid keeps >= 8 steps when B is large (v7x megacore).
    tb = min(batch_tile, _round_up(pl.cdiv(B, 8), SUBLANE))
    grid = (pl.cdiv(B, tb),)

    nbytes = lambda a: a.size * a.dtype.itemsize
    flops = 2 * B * (in_size * hl_p + hl_p * out_p)
    transcendentals = B * (hl_p + out_size)
    bytes_accessed = (nbytes(x) + nbytes(w1_p) + nbytes(b1_p)
                      + nbytes(w2_p) + nbytes(b2_p) + B * out_size * 4)

    return pl.pallas_call(
        _mlp_kernel,
        out_shape=jax.ShapeDtypeStruct((B, out_size), jnp.float32),
        grid=grid,
        in_specs=[
            pl.BlockSpec((tb, in_size), lambda i: (i, 0)),     # x: batch-tiled (ragged last block ok)
            pl.BlockSpec((in_size, hl_p), lambda i: (0, 0)),   # W1p: VMEM-resident
            pl.BlockSpec((1, hl_p), lambda i: (0, 0)),         # b1p: VMEM-resident
            pl.BlockSpec((hl_p, out_p), lambda i: (0, 0)),     # W2p: VMEM-resident
            pl.BlockSpec((1, out_size), lambda i: (0, 0)),     # b2p: VMEM-resident
        ],
        out_specs=pl.BlockSpec((tb, out_size), lambda i: (i, 0)),  # compact output
        compiler_params=pltpu.CompilerParams(
            dimension_semantics=("parallel",),
        ),
        cost_estimate=pl.CostEstimate(
            flops=flops,
            transcendentals=transcendentals,
            bytes_accessed=bytes_accessed,
        ),
    )(x, w1_p, b1_p, w2_p, b2_p)


def _torch_style_linear_init(key, out_features, in_features):
    """Deterministic init mimicking nn.Linear default: U(-1/sqrt(in), 1/sqrt(in))."""
    kw, kb = jax.random.split(key)
    bound = 1.0 / jnp.sqrt(jnp.float32(in_features))
    w = jax.random.uniform(kw, (out_features, in_features), jnp.float32, -bound, bound)
    b = jax.random.uniform(kb, (out_features,), jnp.float32, -bound, bound)
    return w, b


if __name__ == "__main__":
    input_size = 16
    hl_size = 5       # as in the reference script
    output_size = 3
    batch = 8

    key = jax.random.PRNGKey(0)
    kx, k1, k2 = jax.random.split(key, 3)

    x = jax.random.normal(kx, (batch, input_size), jnp.float32)
    w1, b1 = _torch_style_linear_init(k1, hl_size, input_size)
    w2, b2 = _torch_style_linear_init(k2, output_size, hl_size)

    # One-time prep: transpose + pad the parameters (hoisted out of the call).
    params = prepare_params(w1, b1, w2, b2)

    out = neural_net_forward(x, params)
    out = jax.block_until_ready(out)

    # Pure-JAX reference of the same forward pass.
    ref = jax.nn.sigmoid(jax.nn.sigmoid(x @ w1.T + b1) @ w2.T + b2)
    assert out.shape == (batch, output_size)
    # Tolerance covers MXU default-precision (bf16-pass) differences between
    # the kernel and the XLA reference dot path; outputs live in (0, 1), so
    # this still catches any structural/layout error by a wide margin.
    assert jnp.allclose(out, ref, atol=2e-3, rtol=2e-3), \
        float(jnp.max(jnp.abs(out - ref)))

    print("KERNEL_OK")
</pallas_src>

<mosaic_0001>
module attributes {stable_mosaic.version = 11 : i64} {
  func.func @_mlp_kernel(%arg0: i32, %arg1: memref<8x16xf32, #tpu.memory_space<vmem>>, %arg2: memref<16x128xf32, #tpu.memory_space<vmem>>, %arg3: memref<1x128xf32, #tpu.memory_space<vmem>>, %arg4: memref<128x128xf32, #tpu.memory_space<vmem>>, %arg5: memref<1x3xf32, #tpu.memory_space<vmem>>, %arg6: memref<8x3xf32, #tpu.memory_space<vmem>>) attributes {dimension_semantics = [#tpu.dimension_semantics<parallel>], iteration_bounds = array<i64: 1>, scalar_prefetch = 0 : i64, scratch_operands = 0 : i64, tpu.core_type = #tpu.core_type<tc>, window_params = [{transform_indices = @transform_0, window_bounds = array<i64: 8, 16>}, {pipeline_mode = #tpu.pipeline_mode<synchronous>, transform_indices = @transform_1, window_bounds = array<i64: 16, 128>}, {pipeline_mode = #tpu.pipeline_mode<synchronous>, transform_indices = @transform_2, window_bounds = array<i64: 1, 128>}, {pipeline_mode = #tpu.pipeline_mode<synchronous>, transform_indices = @transform_3, window_bounds = array<i64: 128, 128>}, {pipeline_mode = #tpu.pipeline_mode<synchronous>, transform_indices = @transform_4, window_bounds = array<i64: 1, 3>}, {transform_indices = @transform_5, window_bounds = array<i64: 8, 3>}]} {
    %c0 = arith.constant 0 : index
    %c0_0 = arith.constant 0 : index
    %0 = vector.load %arg1[%c0, %c0_0] : memref<8x16xf32, #tpu.memory_space<vmem>>, vector<8x16xf32>
    %c0_1 = arith.constant 0 : index
    %c0_2 = arith.constant 0 : index
    %1 = vector.load %arg2[%c0_1, %c0_2] : memref<16x128xf32, #tpu.memory_space<vmem>>, vector<16x128xf32>
    %cst = arith.constant dense<0.000000e+00> : vector<8x128xf32>
    %2 = tpu.matmul %0, %1, %cst {dimension_numbers = #tpu.dot_dimension_numbers<[1], [0], [0], [1], [0, 0, 1, 1], [], []>} : vector<8x16xf32>, vector<16x128xf32>, vector<8x128xf32> -> vector<8x128xf32>
    %c0_3 = arith.constant 0 : index
    %c0_4 = arith.constant 0 : index
    %3 = vector.load %arg3[%c0_3, %c0_4] : memref<1x128xf32, #tpu.memory_space<vmem>>, vector<1x128xf32>
    %4 = vector.broadcast %3 : vector<1x128xf32> to vector<8x128xf32>
    %5 = arith.addf %2, %4 : vector<8x128xf32>
    %cst_5 = arith.constant 0.000000e+00 : f32
    %6 = vector.broadcast %cst_5 : f32 to vector<8x128xf32>
    %7 = arith.subf %6, %5 : vector<8x128xf32>
    %8 = math.exp %7 : vector<8x128xf32>
    %cst_6 = arith.constant 1.000000e+00 : f32
    %9 = vector.broadcast %cst_6 : f32 to vector<8x128xf32>
    %10 = arith.addf %9, %8 : vector<8x128xf32>
    %cst_7 = arith.constant 1.000000e+00 : f32
    %11 = vector.broadcast %cst_7 : f32 to vector<8x128xf32>
    %12 = arith.divf %11, %10 : vector<8x128xf32>
    %c0_8 = arith.constant 0 : index
    %c0_9 = arith.constant 0 : index
    %13 = vector.load %arg4[%c0_8, %c0_9] : memref<128x128xf32, #tpu.memory_space<vmem>>, vector<128x128xf32>
    %cst_10 = arith.constant dense<0.000000e+00> : vector<8x128xf32>
    %14 = tpu.matmul %12, %13, %cst_10 {dimension_numbers = #tpu.dot_dimension_numbers<[1], [0], [0], [1], [0, 0, 1, 1], [], []>} : vector<8x128xf32>, vector<128x128xf32>, vector<8x128xf32> -> vector<8x128xf32>
    %15 = vector.extract_strided_slice %14 {offsets = [0, 0], sizes = [8, 3], strides = [1, 1]} : vector<8x128xf32> to vector<8x3xf32>
    %c0_11 = arith.constant 0 : index
    %c0_12 = arith.constant 0 : index
    %16 = vector.load %arg5[%c0_11, %c0_12] : memref<1x3xf32, #tpu.memory_space<vmem>>, vector<1x3xf32>
    %17 = vector.broadcast %16 : vector<1x3xf32> to vector<8x3xf32>
    %18 = arith.addf %15, %17 : vector<8x3xf32>
    %cst_13 = arith.constant 0.000000e+00 : f32
    %19 = vector.broadcast %cst_13 : f32 to vector<8x3xf32>
    %20 = arith.subf %19, %18 : vector<8x3xf32>
    %21 = math.exp %20 : vector<8x3xf32>
    %cst_14 = arith.constant 1.000000e+00 : f32
    %22 = vector.broadcast %cst_14 : f32 to vector<8x3xf32>
    %23 = arith.addf %22, %21 : vector<8x3xf32>
    %cst_15 = arith.constant 1.000000e+00 : f32
    %24 = vector.broadcast %cst_15 : f32 to vector<8x3xf32>
    %25 = arith.divf %24, %23 : vector<8x3xf32>
    %c0_16 = arith.constant 0 : index
    %c0_17 = arith.constant 0 : index
    %26 = vector.load %arg6[%c0_16, %c0_17] : memref<8x3xf32, #tpu.memory_space<vmem>>, vector<8x3xf32>
    tpu.vector_store %arg6[%c0_16, %c0_17], %25 {strides = array<i32>} : memref<8x3xf32, #tpu.memory_space<vmem>>, vector<8x3xf32>,
    return
  }
  func.func @transform_0(%arg0: i32) -> (i32, i32) {
    %c0_i32 = arith.constant 0 : i32
    %c0_i32_0 = arith.constant 0 : i32
    return %arg0, %c0_i32 : i32, i32
  }
  func.func @transform_1(%arg0: i32) -> (i32, i32) {
    %c0_i32 = arith.constant 0 : i32
    %c0_i32_0 = arith.constant 0 : i32
    %c0_i32_1 = arith.constant 0 : i32
    return %c0_i32, %c0_i32_0 : i32, i32
  }
  func.func @transform_2(%arg0: i32) -> (i32, i32) {
    %c0_i32 = arith.constant 0 : i32
    %c0_i32_0 = arith.constant 0 : i32
    %c0_i32_1 = arith.constant 0 : i32
    return %c0_i32, %c0_i32_0 : i32, i32
  }
  func.func @transform_3(%arg0: i32) -> (i32, i32) {
    %c0_i32 = arith.constant 0 : i32
    %c0_i32_0 = arith.constant 0 : i32
    %c0_i32_1 = arith.constant 0 : i32
    return %c0_i32, %c0_i32_0 : i32, i32
  }
  func.func @transform_4(%arg0: i32) -> (i32, i32) {
    %c0_i32 = arith.constant 0 : i32
    %c0_i32_0 = arith.constant 0 : i32
    %c0_i32_1 = arith.constant 0 : i32
    return %c0_i32, %c0_i32_0 : i32, i32
  }
  func.func @transform_5(%arg0: i32) -> (i32, i32) {
    %c0_i32 = arith.constant 0 : i32
    %c0_i32_0 = arith.constant 0 : i32
    return %arg0, %c0_i32 : i32, i32
  }
}

</mosaic_0001>

<bundles_post_ra>
// kernel: tpu_custom_call.1
= control target key start
LH: loop header
LB: loop body
LE: loop exit
PB: predicated region body
PF: predicated region fallthrough
CT: control target
= control target key end

     0   :  { %10 = vsyncpa [#allocation3], 0  ;;  %s524_s0 = inlined_call_operand.hbm [shape: f32[8,16], index: 0, kind: input, shape index: {}]   ;;  %s525_s1 = inlined_call_operand.hbm [shape: f32[16,128], index: 1, kind: input, shape index: {}]   ;;  %s526_s2 = inlined_call_operand.vmem [shape: f32[1,128], index: 2, kind: input, shape index: {}]   ;;  %s527_s3 = inlined_call_operand.hbm [shape: f32[128,128], index: 3, kind: input, shape index: {}]   ;;  %s528_s4 = inlined_call_operand.vmem [shape: f32[1,3], index: 4, kind: input, shape index: {}]   ;;  %s529_s5 = inlined_call_operand.vmem [shape: f32[8,3], index: 5, kind: output, shape index: {}]  }
   0x1   :  { %11 = vsyncpa [#allocation5], 0  ;;  %s435_s18 = smov [#allocation4]   ;;  %s365_s22 = scalar_lea.hbm %s525_s1, 256 }
   0x2   :  { %s27_s19 = sshll.u32 %s435_s18, 4  ;;  %p366_p0 = scmp.ne.s32.totalorder %s525_s1, %s365_s22  ;;  %s28_s19 = int_to_ptr.vmem [resolvable:$true] %s27_s19 }
   0x3   :  { %p369_p1 = scmp.lt.u32.totalorder %s365_s22, %s525_s1 }
   0x5   :  { %p371_p2 = pnand %p369_p1, %p366_p0 }
   0x7   :  { %374 = shalt.err (!%p371_p2)
}
   0x8   :  { %s375_s27 = scalar_lea.vmem %s28_s19, 256  ;;  %p380_p4 = scmp.lt.s32.totalorder %s28_s19, %s28_s19 }
   0x9   :  { %p376_p3 = scmp.ne.s32.totalorder %s28_s19, %s375_s27  ;;  %p381_p5 = scmp.lt.s32.totalorder %s375_s27, %s375_s27 }
   0xb   :  { %p382_p6 = por %p381_p5, %p380_p4 }
   0xd   :  { %p383_p7 = pnand %p382_p6, %p376_p3 }
   0xf   :  { %386 = shalt.err (!%p383_p7)
}
  0x10   :  { %s436_s28 = smov 128   ;;  %s437_s29 = smov 8  }
  0x11   :  { %33 = dma.hbm_to_vmem [thread:$0]  %s525_s1, 256, %s28_s19, [#allocation5], %s436_s28, %s436_s28, %s437_s29  }
  0x12   :  { %s438_s7 = smov [#allocation2]   ;;  %s439_s9 = smov [#allocation6]  }
  0x13   :  { %s18_s8 = sshll.u32 %s438_s7, 4  ;;  %s41_s10 = sshll.u32 %s439_s9, 4  ;;  %s19_s8 = int_to_ptr.vmem [resolvable:$true] %s18_s8  ;;  %s42_s10 = int_to_ptr.vmem [resolvable:$true] %s41_s10 }
  0x14   :  { %s387_s13 = scalar_lea.hbm %s524_s0, 128 }
  0x15   :  { %p388_p8 = scmp.ne.s32.totalorder %s524_s0, %s387_s13  ;;  %p391_p9 = scmp.lt.u32.totalorder %s387_s13, %s524_s0 }
  0x17   :  { %p393_p10 = pnand %p391_p9, %p388_p8 }
  0x19   :  { %396 = shalt.err (!%p393_p10)
}
  0x1a   :  { %s397_s1 = scalar_lea.vmem %s19_s8, 128  ;;  %p402_p12 = scmp.lt.s32.totalorder %s19_s8, %s19_s8 }
  0x1b   :  { %p398_p11 = scmp.ne.s32.totalorder %s19_s8, %s397_s1  ;;  %p403_p13 = scmp.lt.s32.totalorder %s397_s1, %s397_s1 }
  0x1d   :  { %p404_p0 = por %p403_p13, %p402_p12 }
  0x1f   :  { %p405_p1 = pnand %p404_p0, %p398_p11 }
  0x21   :  { %408 = shalt.err (!%p405_p1)
}
  0x22   :  { %21 = dma.hbm_to_vmem [thread:$0]  %s524_s0, 128, %s19_s8, [#allocation3]  }
  0x23   :  { %s409_s22 = scalar_lea.hbm %s527_s3, 2048 }
  0x24   :  { %p410_p2 = scmp.ne.s32.totalorder %s527_s3, %s409_s22  ;;  %p413_p3 = scmp.lt.u32.totalorder %s409_s22, %s527_s3 }
  0x26   :  { %p415_p4 = pnand %p413_p3, %p410_p2 }
  0x28   :  { %418 = shalt.err (!%p415_p4)
}
  0x29   :  { %s419_s27 = scalar_lea.vmem %s42_s10, 2048  ;;  %p424_p6 = scmp.lt.s32.totalorder %s42_s10, %s42_s10 }
  0x2a   :  { %p420_p5 = scmp.ne.s32.totalorder %s42_s10, %s419_s27  ;;  %p425_p7 = scmp.lt.s32.totalorder %s419_s27, %s419_s27 }
  0x2c   :  { %p426_p8 = por %p425_p7, %p424_p6 }
  0x2e   :  { %p427_p9 = pnand %p426_p8, %p420_p5 }
  0x30   :  { %430 = shalt.err (!%p427_p9)
}
  0x31   :  { %47 = dma.hbm_to_vmem [thread:$0]  %s527_s3, 2048, %s42_s10, [#allocation5], %s436_s28, %s436_s28, %s437_s29  }
  0x32   :  { %431 = dma.done.wait [#allocation3], 128  }
  0x33   :  { %432 = vsyncadd [#allocation3], 4294967168 }
  0x34   :  { %433 = dma.done.wait [#allocation5], 2304  }
  0x35   :  { %434 = vsyncadd [#allocation5], 4294964992  ;;  %v440_v0 = vmov 0.0|0.0   ;;  %vm441_vm0 = vmmov 0   ;;  %v442_v1 = vmov 0.0   ;;  %v60_v2 = vld [vmem:[#allocation4] sm:$0xff] }
  0x36   :  { %322 = vmatprep.subr.bf16.mxu0 %v440_v0  ;;  %284 = vmatprep.mubr.msk.f32.mxu0 %vm441_vm0, %v442_v1  ;;  %v61_v3 = vld [vmem:[#allocation4 + $0x8] sm:$0xff]  ;;  %v59_v5 = vld [vmem:[#allocation2] sm:$0xff]  ;;  %vm69_vm1 = vcmask 130048   ;;  %v149_v6 = vld [vmem:[#allocation6] sm:$0xff]  ;;  %vm249_vm2 = vcmask 23552  }
  0x37   :  { %325 = vmatprep.subr.bf16.mxu1 %v440_v0  ;;  %319 = vmatprep.mubr.msk.f32.mxu1 %vm441_vm0, %v442_v1  ;;  %v323_v4 = vpack.c.bf16 %v61_v3, %v60_v2  ;;  %v150_v7 = vld [vmem:[#allocation6 + $0x8] sm:$0xff]  ;;  %v151_v9 = vld [vmem:[#allocation6 + $0x10] sm:$0xff]  ;;  %v152_v10 = vld [vmem:[#allocation6 + $0x18] sm:$0xff] }
  0x38   :  { %v326_v8 = vpack.c.bf16 %v150_v7, %v149_v6  ;;  %v329_v11 = vpack.c.bf16 %v152_v10, %v151_v9  ;;  %v153_v12 = vld [vmem:[#allocation6 + $0x20] sm:$0xff]  ;;  %v154_v13 = vld [vmem:[#allocation6 + $0x28] sm:$0xff]  ;;  %v155_v15 = vld [vmem:[#allocation6 + $0x30] sm:$0xff] }
  0x39   :  { %324 = vmatpush3.bf16.msra.mxu0 %v323_v4  ;;  %v332_v14 = vpack.c.bf16 %v154_v13, %v153_v12  ;;  %v156_v16 = vld [vmem:[#allocation6 + $0x38] sm:$0xff]  ;;  %v157_v18 = vld [vmem:[#allocation6 + $0x40] sm:$0xff]  ;;  %v158_v19 = vld [vmem:[#allocation6 + $0x48] sm:$0xff] }
  0x3a   :  { %327 = vmatpush3.bf16.msra.mxu1 %v326_v8  ;;  %v335_v17 = vpack.c.bf16 %v156_v16, %v155_v15  ;;  %v338_v20 = vpack.c.bf16 %v158_v19, %v157_v18  ;;  %v159_v21 = vld [vmem:[#allocation6 + $0x50] sm:$0xff]  ;;  %v160_v22 = vld [vmem:[#allocation6 + $0x58] sm:$0xff]  ;;  %v161_v24 = vld [vmem:[#allocation6 + $0x60] sm:$0xff] }
  0x3b   :  { %328 = vmatprep.subr.bf16.mxu1 %v440_v0  ;;  %v341_v23 = vpack.c.bf16 %v160_v22, %v159_v21  ;;  %v162_v25 = vld [vmem:[#allocation6 + $0x68] sm:$0xff]  ;;  %v163_v27 = vld [vmem:[#allocation6 + $0x70] sm:$0xff]  ;;  %v164_v28 = vld [vmem:[#allocation6 + $0x78] sm:$0xff] }
  0x3c   :  { %285 = vmatmul.mubr.msk.f32.vlgmr.msra.gmra.mrb[0].mxu0 %vm69_vm1, %v59_v5  ;;  %v344_v26 = vpack.c.bf16 %v162_v25, %v161_v24  ;;  %v347_v29 = vpack.c.bf16 %v164_v28, %v163_v27  ;;  %v257_v30 = vld [vmem:[%s526_s2] ss:$0 sm:$0xff] }
  0x3d   :  { %v259_v39 = vld [vmem:[%s528_s4] ss:$0 sm:$0xff] }
  0x3e   :  { %330 = vmatpush3.bf16.msra.mxu1 %v329_v11 }
  0x3f   :  { %331 = vmatprep.subr.bf16.mxu1 %v440_v0 }
  0x42   :  { %333 = vmatpush3.bf16.msra.mxu1 %v332_v14 }
  0x43   :  { %334 = vmatprep.subr.bf16.mxu1 %v440_v0 }
  0x46   :  { %336 = vmatpush3.bf16.msra.mxu1 %v335_v17 }
  0x47   :  { %337 = vmatprep.subr.bf16.mxu1 %v440_v0 }
  0x4a   :  { %339 = vmatpush3.bf16.msra.mxu1 %v338_v20 }
  0x4b   :  { %340 = vmatprep.subr.bf16.mxu1 %v440_v0 }
  0x4e   :  { %342 = vmatpush3.bf16.msra.mxu1 %v341_v23 }
  0x4f   :  { %343 = vmatprep.subr.bf16.mxu1 %v440_v0 }
  0x52   :  { %345 = vmatpush3.bf16.msra.mxu1 %v344_v26 }
  0x53   :  { %346 = vmatprep.subr.bf16.mxu1 %v440_v0 }
  0x56   :  { %348 = vmatpush3.bf16.msra.mxu1 %v347_v29 }
 0x10f   :  { %v139_v31 = vpop.f32.mrb[0].mxu0 }
 0x110   :  { %v140_v32 = vadd.f32 %v257_v30, %v139_v31  ;;  %v286_v33 = vpop.f32.mrb[1].mxu0 }
 0x112   :  { %v143_v34 = vsub.f32 0.0, %v140_v32 }
 0x114   :  { %v144_v35 = vmul.f32 1.442695, %v143_v34 }
 0x116   :  { %357 = vpow2.f32 %v144_v35 }
 0x120   :  { %v358_v36 = vpop.eup %357 }
 0x121   :  { %v146_v37 = vadd.f32 1.0, %v358_v36 }
 0x123   :  { %359 = vrcp.f32 %v146_v37 }
 0x12d   :  { %v360_v38 = vpop.eup %359 }
 0x12e   :  { %320 = vmatmul.mubr.f32.vlgmr.msra.gmra.mrb[0].mxu1 %v360_v38 }
 0x201   :  { %v231_v40 = vpop.f32.mrb[0].mxu1 }
 0x202   :  { %v242_v41 = vadd.f32 %v259_v39, %v231_v40  ;;  %v321_v42 = vpop.f32.mrb[1].mxu1 }
 0x204   :  { %v243_v43 = vsub.f32 0.0, %v242_v41 }
 0x206   :  { %v244_v44 = vmul.f32 1.442695, %v243_v43 }
 0x208   :  { %361 = vpow2.f32 %v244_v44 }
 0x212   :  { %v362_v45 = vpop.eup %361 }
 0x213   :  { %v246_v46 = vadd.f32 1.0, %v362_v45 }
 0x215   :  { %363 = vrcp.f32 %v246_v46 }
 0x21f   :  { %v364_v47 = vpop.eup %363 }
 0x220   :  { %250 = vst.msk [vmem:[%s529_s5] sm:$0xff] %vm249_vm2, %v364_v47 }
 0x221   :  { %255 = vsyncpa [#allocation3], 1 }
 0x222   :  { %256 = vsyncpa [#allocation5], 1 }

</bundles_post_ra>
